<compile_context>
chip_gen: v6e
topology: v6e:2x2x1
jax: 0.10.0
libtpu: 0.0.40
codegen_flags: <defaults>
</compile_context>

<pallas_src>
import functools

import jax
import jax.numpy as jnp
from jax.experimental import pallas as pl
from jax.experimental.pallas import tpu as pltpu

_H = 128  # lane-padded hidden / output width (hidden_layers <= 128 assumed)


def _round_up(x, m):
    return (x + m - 1) // m * m


def _policy_mlp_kernel(s_ref, p_ref, mean_ref, *, sp):
    """Fused MLP: relu(s@W_in+b) -> relu(@W_h+b) -> @W_out+b (all 128-lane)."""
    # Static, tile-aligned views into the resident packed parameter slab.
    w_in = p_ref[0:sp, :]                       # (sp, 128)
    w_h = p_ref[sp:sp + _H, :]                  # (128, 128)
    w_out = p_ref[sp + _H:sp + 2 * _H, :]       # (128, 128)
    b_blk = p_ref[sp + 2 * _H:sp + 2 * _H + 8, :]   # (8, 128) aligned bias block
    b_in = b_blk[0:1, :]
    b_h = b_blk[1:2, :]
    b_out = b_blk[2:3, :]

    x = jnp.dot(s_ref[...], w_in, preferred_element_type=jnp.float32)
    x = jnp.maximum(x + b_in, 0.0)

    x = jnp.dot(x, w_h, preferred_element_type=jnp.float32)
    x = jnp.maximum(x + b_h, 0.0)

    mean = jnp.dot(x, w_out, preferred_element_type=jnp.float32)
    mean_ref[...] = (mean + b_out).astype(mean_ref.dtype)


@jax.jit
def ppo_policy_forward(s, params):
    """Returns (mean, sigma) describing the diagonal Normal policy distribution.

    s: (B, state_dim) float32
    params: {"slab": packed weights/biases, "sigma": (1, action_dim)}
    """
    B, state_dim = s.shape
    slab = params["slab"]
    sigma = params["sigma"]
    action_dim = sigma.shape[1]
    sp = slab.shape[0] - 2 * _H - 8            # lane/sublane-padded state_dim

    # Batch tiling: big, sublane-aligned tiles; pad batch up to a tile multiple.
    tb = min(1024, _round_up(B, 8))
    bp = _round_up(B, tb)
    s_pad = jnp.zeros((bp, sp), s.dtype).at[:B, :state_dim].set(s)

    grid_spec = pltpu.PrefetchScalarGridSpec(
        num_scalar_prefetch=0,
        grid=(bp // tb,),
        in_specs=[
            pl.BlockSpec((tb, sp), lambda i: (i, 0)),          # states: streamed
            pl.BlockSpec(slab.shape, lambda i: (0, 0)),        # params: resident
        ],
        out_specs=pl.BlockSpec((tb, _H), lambda i: (i, 0)),    # lane-dense output
    )

    mean_pad = pl.pallas_call(
        functools.partial(_policy_mlp_kernel, sp=sp),
        out_shape=jax.ShapeDtypeStruct((bp, _H), jnp.float32),
        grid_spec=grid_spec,
        compiler_params=pltpu.CompilerParams(
            dimension_semantics=("parallel",),
        ),
    )(s_pad, slab)

    mean = mean_pad[:B, :action_dim]
    # sigma stays (1, action_dim); it broadcasts over the batch like torch.
    return mean, sigma


def log_prob_sum(mean, sigma, actions):
    """dist.log_prob(actions).sum(-1, keepdim=True) — plain JAX glue."""
    var = sigma * sigma
    lp = (-((actions - mean) ** 2) / (2.0 * var)
          - jnp.log(sigma) - 0.5 * jnp.log(2.0 * jnp.pi))
    return lp.sum(axis=-1, keepdims=True)


def init_params(key, state_dim, hidden_layers, action_dim):
    """nn.Linear-style init, packed into one lane-padded parameter slab."""
    h0, h1 = hidden_layers
    assert h0 <= _H and h1 <= _H and action_dim <= _H
    ks = jax.random.split(key, 7)

    def lin(kw, kb, fan_in, fan_out):
        bound = 1.0 / jnp.sqrt(float(fan_in))
        w = jax.random.uniform(kw, (fan_in, fan_out), jnp.float32, -bound, bound)
        b = jax.random.uniform(kb, (fan_out,), jnp.float32, -bound, bound)
        return w, b

    w_in, b_in = lin(ks[0], ks[1], state_dim, h0)
    w_h, b_h = lin(ks[2], ks[3], h0, h1)
    w_out, b_out = lin(ks[4], ks[5], h1, action_dim)
    # self.sigma = nn.Parameter(torch.rand(1, action_dim) * 5)
    sigma = jax.random.uniform(ks[6], (1, action_dim), jnp.float32) * 5.0

    sp = _round_up(state_dim, 8)
    slab = jnp.zeros((sp + 2 * _H + 8, _H), jnp.float32)
    slab = slab.at[:state_dim, :h0].set(w_in)                    # W_in
    slab = slab.at[sp:sp + h0, :h1].set(w_h)                     # W_h
    slab = slab.at[sp + _H:sp + _H + h1, :action_dim].set(w_out)  # W_out
    boff = sp + 2 * _H
    slab = slab.at[boff + 0, :h0].set(b_in)
    slab = slab.at[boff + 1, :h1].set(b_h)
    slab = slab.at[boff + 2, :action_dim].set(b_out)

    # TODO(synk): fc_sigma is defined in the PyTorch __init__ but never used in
    # forward(); it is intentionally omitted here.
    params = dict(slab=slab, sigma=sigma)
    raw = dict(w_in=w_in, b_in=b_in, w_h=w_h, b_h=b_h, w_out=w_out, b_out=b_out)
    return params, raw


def _reference_forward(s, raw):
    x = jnp.maximum(s @ raw["w_in"] + raw["b_in"], 0.0)
    x = jnp.maximum(x @ raw["w_h"] + raw["b_h"], 0.0)
    return x @ raw["w_out"] + raw["b_out"]


if __name__ == "__main__":
    state_dim, action_dim = 8, 4
    hidden_layers = [64, 64]
    batch = 2

    key = jax.random.PRNGKey(0)
    k_param, k_state, k_act = jax.random.split(key, 3)

    params, raw = init_params(k_param, state_dim, hidden_layers, action_dim)
    s = jax.random.normal(k_state, (batch, state_dim), jnp.float32)

    mean, sigma = ppo_policy_forward(s, params)
    jax.block_until_ready(mean)
    jax.block_until_ready(sigma)

    # get_action_log_prob path (plain JAX glue on top of kernel output)
    actions = jax.random.normal(k_act, (batch, action_dim), jnp.float32)
    lp = log_prob_sum(mean, sigma, actions)
    jax.block_until_ready(lp)

    # correctness check against a plain-JAX reference of the same MLP
    ref_mean = _reference_forward(s, raw)
    assert jnp.allclose(mean, ref_mean, atol=1e-2, rtol=1e-2)

    assert mean.shape == (batch, action_dim)
    assert sigma.shape == (1, action_dim)
    assert lp.shape == (batch, 1)
    print("KERNEL_OK")
</pallas_src>

<mosaic_0001>
module attributes {stable_mosaic.version = 11 : i64} {
  func.func @_policy_mlp_kernel(%arg0: i32, %arg1: memref<8x8xf32, #tpu.memory_space<vmem>>, %arg2: memref<272x128xf32, #tpu.memory_space<vmem>>, %arg3: memref<8x128xf32, #tpu.memory_space<vmem>>) attributes {dimension_semantics = [#tpu.dimension_semantics<parallel>], iteration_bounds = array<i64: 1>, scalar_prefetch = 0 : i64, scratch_operands = 0 : i64, tpu.core_type = #tpu.core_type<tc>, window_params = [{transform_indices = @transform_0, window_bounds = array<i64: 8, 8>}, {pipeline_mode = #tpu.pipeline_mode<synchronous>, transform_indices = @transform_1, window_bounds = array<i64: 272, 128>}, {transform_indices = @transform_2, window_bounds = array<i64: 8, 128>}]} {
    %c0 = arith.constant 0 : index
    %c0_0 = arith.constant 0 : index
    %0 = vector.load %arg2[%c0, %c0_0] : memref<272x128xf32, #tpu.memory_space<vmem>>, vector<8x128xf32>
    %c8 = arith.constant 8 : index
    %c0_1 = arith.constant 0 : index
    %1 = vector.load %arg2[%c8, %c0_1] : memref<272x128xf32, #tpu.memory_space<vmem>>, vector<128x128xf32>
    %c136 = arith.constant 136 : index
    %c0_2 = arith.constant 0 : index
    %2 = vector.load %arg2[%c136, %c0_2] : memref<272x128xf32, #tpu.memory_space<vmem>>, vector<128x128xf32>
    %c264 = arith.constant 264 : index
    %c0_3 = arith.constant 0 : index
    %3 = vector.load %arg2[%c264, %c0_3] : memref<272x128xf32, #tpu.memory_space<vmem>>, vector<8x128xf32>
    %4 = vector.extract_strided_slice %3 {offsets = [0, 0], sizes = [1, 128], strides = [1, 1]} : vector<8x128xf32> to vector<1x128xf32>
    %5 = vector.extract_strided_slice %3 {offsets = [1, 0], sizes = [1, 128], strides = [1, 1]} : vector<8x128xf32> to vector<1x128xf32>
    %6 = vector.extract_strided_slice %3 {offsets = [2, 0], sizes = [1, 128], strides = [1, 1]} : vector<8x128xf32> to vector<1x128xf32>
    %c0_4 = arith.constant 0 : index
    %c0_5 = arith.constant 0 : index
    %7 = vector.load %arg1[%c0_4, %c0_5] : memref<8x8xf32, #tpu.memory_space<vmem>>, vector<8x8xf32>
    %cst = arith.constant dense<0.000000e+00> : vector<8x128xf32>
    %8 = tpu.matmul %7, %0, %cst {dimension_numbers = #tpu.dot_dimension_numbers<[1], [0], [0], [1], [0, 0, 1, 1], [], []>} : vector<8x8xf32>, vector<8x128xf32>, vector<8x128xf32> -> vector<8x128xf32>
    %9 = vector.broadcast %4 : vector<1x128xf32> to vector<8x128xf32>
    %10 = arith.addf %8, %9 : vector<8x128xf32>
    %cst_6 = arith.constant 0.000000e+00 : f32
    %11 = vector.broadcast %cst_6 : f32 to vector<8x128xf32>
    %12 = arith.maximumf %10, %11 : vector<8x128xf32>
    %cst_7 = arith.constant dense<0.000000e+00> : vector<8x128xf32>
    %13 = tpu.matmul %12, %1, %cst_7 {dimension_numbers = #tpu.dot_dimension_numbers<[1], [0], [0], [1], [0, 0, 1, 1], [], []>} : vector<8x128xf32>, vector<128x128xf32>, vector<8x128xf32> -> vector<8x128xf32>
    %14 = vector.broadcast %5 : vector<1x128xf32> to vector<8x128xf32>
    %15 = arith.addf %13, %14 : vector<8x128xf32>
    %cst_8 = arith.constant 0.000000e+00 : f32
    %16 = vector.broadcast %cst_8 : f32 to vector<8x128xf32>
    %17 = arith.maximumf %15, %16 : vector<8x128xf32>
    %cst_9 = arith.constant dense<0.000000e+00> : vector<8x128xf32>
    %18 = tpu.matmul %17, %2, %cst_9 {dimension_numbers = #tpu.dot_dimension_numbers<[1], [0], [0], [1], [0, 0, 1, 1], [], []>} : vector<8x128xf32>, vector<128x128xf32>, vector<8x128xf32> -> vector<8x128xf32>
    %19 = vector.broadcast %6 : vector<1x128xf32> to vector<8x128xf32>
    %20 = arith.addf %18, %19 : vector<8x128xf32>
    %c0_10 = arith.constant 0 : index
    %c0_11 = arith.constant 0 : index
    %21 = vector.load %arg3[%c0_10, %c0_11] : memref<8x128xf32, #tpu.memory_space<vmem>>, vector<8x128xf32>
    tpu.vector_store %arg3[%c0_10, %c0_11], %20 {strides = array<i32>} : memref<8x128xf32, #tpu.memory_space<vmem>>, vector<8x128xf32>,
    return
  }
  func.func @transform_0(%arg0: i32) -> (i32, i32) {
    %c0_i32 = arith.constant 0 : i32
    %c0_i32_0 = arith.constant 0 : i32
    return %arg0, %c0_i32 : i32, i32
  }
  func.func @transform_1(%arg0: i32) -> (i32, i32) {
    %c0_i32 = arith.constant 0 : i32
    %c0_i32_0 = arith.constant 0 : i32
    %c0_i32_1 = arith.constant 0 : i32
    return %c0_i32, %c0_i32_0 : i32, i32
  }
  func.func @transform_2(%arg0: i32) -> (i32, i32) {
    %c0_i32 = arith.constant 0 : i32
    %c0_i32_0 = arith.constant 0 : i32
    return %arg0, %c0_i32 : i32, i32
  }
}

</mosaic_0001>

<bundles_post_ra>
// kernel: ppo_policy_forward.1
= control target key start
LH: loop header
LB: loop body
LE: loop exit
PB: predicated region body
PF: predicated region fallthrough
CT: control target
= control target key end

     0   :  { %7 = vsyncpa [#allocation3], 0  ;;  %s433_s9 = smov [#allocation2]   ;;  %s501_s0 = inlined_call_operand.vmem [shape: f32[8,8], index: 0, kind: input, shape index: {}]   ;;  %s502_s1 = inlined_call_operand.hbm [shape: f32[272,128], index: 1, kind: input, shape index: {}]   ;;  %s503_s2 = inlined_call_operand.vmem [shape: f32[8,128], index: 2, kind: output, shape index: {}]  }
   0x1   :  { %s15_s10 = sshll.u32 %s433_s9, 4  ;;  %s16_s10 = int_to_ptr.vmem [resolvable:$true] %s15_s10 }
   0x2   :  { %s419_s11 = scalar_lea.vmem %s16_s10, 4352  ;;  %p424_p1 = scmp.lt.s32.totalorder %s16_s10, %s16_s10 }
   0x3   :  { %p420_p0 = scmp.ne.s32.totalorder %s16_s10, %s419_s11  ;;  %p425_p2 = scmp.lt.s32.totalorder %s419_s11, %s419_s11 }
   0x5   :  { %p426_p3 = por %p425_p2, %p424_p1 }
   0x7   :  { %p427_p4 = pnand %p426_p3, %p420_p0 }
   0x9   :  { %430 = shalt.err (!%p427_p4)
}
   0xa   :  { %s434_s12 = smov 128   ;;  %s435_s13 = smov 8  }
   0xb   :  { %21 = dma.hbm_to_vmem [thread:$0]  %s502_s1, 4352, %s16_s10, [#allocation3], %s434_s12, %s434_s12, %s435_s13  }
   0xc   :  { %431 = dma.done.wait [#allocation3], 4352  }
   0xd   :  { %432 = vsyncadd [#allocation3], 4294962944  ;;  %v436_v0 = vmov 0.0   ;;  %vm437_vm0 = vmmov 0   ;;  %vm64_vm1 = vcmask 64512   ;;  %v25_v1 = vld [vmem:[#allocation2] sm:$0xff]  ;;  %v60_v32 = vlaneseq }
   0xe   :  { %331 = vmatprep.subr.mxu0 %v436_v0  ;;  %333 = vmatprep.mubr.msk.f32.mxu0 %vm437_vm0, %v436_v0  ;;  %v59_v2 = vld [vmem:[%s501_s0] sm:$0xff]  ;;  %v40_v4 = vld [vmem:[#allocation2 + $0x78] sm:$0xff]  ;;  %v39_v5 = vld [vmem:[#allocation2 + $0x70] sm:$0xff] }
   0xf   :  { %336 = vmatprep.subr.mxu1 %v436_v0  ;;  %368 = vmatprep.mubr.msk.f32.mxu1 %vm437_vm0, %v436_v0  ;;  %v41_v3 = vld [vmem:[#allocation2 + $0x80] sm:$0xff]  ;;  %v38_v6 = vld [vmem:[#allocation2 + $0x68] sm:$0xff]  ;;  %v36_v8 = vld [vmem:[#allocation2 + $0x58] sm:$0xff]  ;;  %v61_v33 = vshrl.u32 %v60_v32, 7 }
  0x10   :  { %332 = vmatpush3.msra.mxu0 %v25_v1  ;;  %337 = vmatpush3.msra.mxu1 %v41_v3  ;;  %v37_v7 = vld [vmem:[#allocation2 + $0x60] sm:$0xff]  ;;  %v35_v9 = vld [vmem:[#allocation2 + $0x50] sm:$0xff]  ;;  %v34_v10 = vld [vmem:[#allocation2 + $0x48] sm:$0xff] }
  0x11   :  { %334 = vmatmul.mubr.msk.f32.vlgmr.msra.gmra.mxu0 %vm64_vm1, %v59_v2  ;;  %338 = vmatprep.subr.mxu1 %v436_v0  ;;  %v33_v11 = vld [vmem:[#allocation2 + $0x40] sm:$0xff]  ;;  %v32_v12 = vld [vmem:[#allocation2 + $0x38] sm:$0xff]  ;;  %v31_v13 = vld [vmem:[#allocation2 + $0x30] sm:$0xff]  ;;  %v62_v34 = vsub.s32 0, %v61_v33  ;;  %v141_v44 = vsub.s32 1, %v61_v33  ;;  %v216_v50 = vsub.s32 2, %v61_v33 }
  0x12   :  { %339 = vmatpush3.msra.mxu1 %v40_v4  ;;  %371 = vmatprep.subr.mxu0 %v436_v0  ;;  %v30_v14 = vld [vmem:[#allocation2 + $0x28] sm:$0xff]  ;;  %v29_v15 = vld [vmem:[#allocation2 + $0x20] sm:$0xff]  ;;  %v28_v16 = vld [vmem:[#allocation2 + $0x18] sm:$0xff] }
  0x13   :  { %340 = vmatprep.subr.mxu1 %v436_v0  ;;  %403 = vmatprep.mubr.msk.f32.mxu0 %vm437_vm0, %v436_v0  ;;  %v27_v17 = vld [vmem:[#allocation2 + $0x10] sm:$0xff]  ;;  %v26_v18 = vld [vmem:[#allocation2 + $0x8] sm:$0xff]  ;;  %v57_v19 = vld [vmem:[#allocation2 + $0x100] sm:$0xff] }
  0x14   :  { %341 = vmatpush3.msra.mxu1 %v39_v5  ;;  %v56_v20 = vld [vmem:[#allocation2 + $0xf8] sm:$0xff]  ;;  %372 = vmatpush3.msra.mxu0 %v57_v19  ;;  %v55_v21 = vld [vmem:[#allocation2 + $0xf0] sm:$0xff]  ;;  %v54_v22 = vld [vmem:[#allocation2 + $0xe8] sm:$0xff] }
  0x15   :  { %342 = vmatprep.subr.mxu1 %v436_v0  ;;  %373 = vmatprep.subr.mxu0 %v436_v0  ;;  %v53_v23 = vld [vmem:[#allocation2 + $0xe0] sm:$0xff]  ;;  %v52_v24 = vld [vmem:[#allocation2 + $0xd8] sm:$0xff]  ;;  %v51_v25 = vld [vmem:[#allocation2 + $0xd0] sm:$0xff] }
  0x16   :  { %343 = vmatpush3.msra.mxu1 %v38_v6  ;;  %374 = vmatpush3.msra.mxu0 %v56_v20  ;;  %v50_v26 = vld [vmem:[#allocation2 + $0xc8] sm:$0xff]  ;;  %v49_v27 = vld [vmem:[#allocation2 + $0xc0] sm:$0xff]  ;;  %v48_v28 = vld [vmem:[#allocation2 + $0xb8] sm:$0xff] }
  0x17   :  { %344 = vmatprep.subr.mxu1 %v436_v0  ;;  %375 = vmatprep.subr.mxu0 %v436_v0  ;;  %v47_v29 = vld [vmem:[#allocation2 + $0xb0] sm:$0xff]  ;;  %v46_v30 = vld [vmem:[#allocation2 + $0xa8] sm:$0xff]  ;;  %v45_v31 = vld [vmem:[#allocation2 + $0xa0] sm:$0xff] }
  0x18   :  { %345 = vmatpush3.msra.mxu1 %v37_v7  ;;  %376 = vmatpush3.msra.mxu0 %v55_v21  ;;  %v58_v35 = vld [vmem:[#allocation2 + $0x108] sm:$0xff]  ;;  %v44_v41 = vld [vmem:[#allocation2 + $0x98] sm:$0xff]  ;;  %v43_v42 = vld [vmem:[#allocation2 + $0x90] sm:$0xff] }
  0x19   :  { %346 = vmatprep.subr.mxu1 %v436_v0  ;;  %377 = vmatprep.subr.mxu0 %v436_v0  ;;  %v63_v36 = vrot.slane %v58_v35, %v62_v34  ;;  %v42_v43 = vld [vmem:[#allocation2 + $0x88] sm:$0xff]  ;;  %v142_v45 = vrot.slane %v58_v35, %v141_v44  ;;  %v217_v51 = vrot.slane %v58_v35, %v216_v50 }
  0x1a   :  { %347 = vmatpush3.msra.mxu1 %v36_v8  ;;  %378 = vmatpush3.msra.mxu0 %v54_v22 }
  0x1b   :  { %348 = vmatprep.subr.mxu1 %v436_v0  ;;  %379 = vmatprep.subr.mxu0 %v436_v0 }
  0x1c   :  { %349 = vmatpush3.msra.mxu1 %v35_v9  ;;  %380 = vmatpush3.msra.mxu0 %v53_v23 }
  0x1d   :  { %350 = vmatprep.subr.mxu1 %v436_v0  ;;  %381 = vmatprep.subr.mxu0 %v436_v0 }
  0x1e   :  { %351 = vmatpush3.msra.mxu1 %v34_v10  ;;  %382 = vmatpush3.msra.mxu0 %v52_v24 }
  0x1f   :  { %352 = vmatprep.subr.mxu1 %v436_v0  ;;  %383 = vmatprep.subr.mxu0 %v436_v0 }
  0x20   :  { %353 = vmatpush3.msra.mxu1 %v33_v11  ;;  %384 = vmatpush3.msra.mxu0 %v51_v25 }
  0x21   :  { %354 = vmatprep.subr.mxu1 %v436_v0  ;;  %385 = vmatprep.subr.mxu0 %v436_v0 }
  0x22   :  { %355 = vmatpush3.msra.mxu1 %v32_v12  ;;  %386 = vmatpush3.msra.mxu0 %v50_v26 }
  0x23   :  { %356 = vmatprep.subr.mxu1 %v436_v0  ;;  %387 = vmatprep.subr.mxu0 %v436_v0 }
  0x24   :  { %357 = vmatpush3.msra.mxu1 %v31_v13  ;;  %388 = vmatpush3.msra.mxu0 %v49_v27 }
  0x25   :  { %358 = vmatprep.subr.mxu1 %v436_v0  ;;  %389 = vmatprep.subr.mxu0 %v436_v0 }
  0x26   :  { %359 = vmatpush3.msra.mxu1 %v30_v14  ;;  %390 = vmatpush3.msra.mxu0 %v48_v28 }
  0x27   :  { %360 = vmatprep.subr.mxu1 %v436_v0  ;;  %391 = vmatprep.subr.mxu0 %v436_v0 }
  0x28   :  { %361 = vmatpush3.msra.mxu1 %v29_v15  ;;  %392 = vmatpush3.msra.mxu0 %v47_v29 }
  0x29   :  { %362 = vmatprep.subr.mxu1 %v436_v0  ;;  %393 = vmatprep.subr.mxu0 %v436_v0 }
  0x2a   :  { %363 = vmatpush3.msra.mxu1 %v28_v16  ;;  %394 = vmatpush3.msra.mxu0 %v46_v30 }
  0x2b   :  { %364 = vmatprep.subr.mxu1 %v436_v0  ;;  %395 = vmatprep.subr.mxu0 %v436_v0 }
  0x2c   :  { %365 = vmatpush3.msra.mxu1 %v27_v17  ;;  %396 = vmatpush3.msra.mxu0 %v45_v31 }
  0x2d   :  { %366 = vmatprep.subr.mxu1 %v436_v0  ;;  %397 = vmatprep.subr.mxu0 %v436_v0 }
  0x2e   :  { %367 = vmatpush3.msra.mxu1 %v26_v18  ;;  %398 = vmatpush3.msra.mxu0 %v44_v41 }
  0x2f   :  { %399 = vmatprep.subr.mxu0 %v436_v0 }
  0x30   :  { %400 = vmatpush3.msra.mxu0 %v43_v42 }
  0x31   :  { %401 = vmatprep.subr.mxu0 %v436_v0 }
  0x32   :  { %402 = vmatpush3.msra.mxu0 %v42_v43 }
  0xd1   :  { %v134_v37 = vpop.f32.mrf.mxu0 }
  0xd2   :  { %v135_v38 = vadd.f32 %v134_v37, %v63_v36 }
  0xd3   :  { %v335_v39 = vpop.f32.mrf.mxu0 }
  0xd4   :  { %v138_v40 = vmax.f32 %v135_v38, 0.0 }
  0xd6   :  { %369 = vmatmul.mubr.f32.vlgmr.msra.gmra.mxu1 %v138_v40 }
 0x196   :  { %v209_v46 = vpop.f32.mrf.mxu1 }
 0x197   :  { %v210_v47 = vadd.f32 %v209_v46, %v142_v45 }
 0x198   :  { %v370_v48 = vpop.f32.mrf.mxu1 }
 0x199   :  { %v213_v49 = vmax.f32 %v210_v47, 0.0 }
 0x19b   :  { %404 = vmatmul.mubr.f32.vlgmr.msra.gmra.mxu0 %v213_v49 }
 0x25b   :  { %v284_v52 = vpop.f32.mrf.mxu0 }
 0x25c   :  { %v285_v53 = vadd.f32 %v284_v52, %v217_v51 }
 0x25d   :  { %v405_v54 = vpop.f32.mrf.mxu0 }
 0x25e   :  { %288 = vst [vmem:[%s503_s2] sm:$0xff] %v285_v53 }
 0x25f   :  { %293 = vsyncpa [#allocation3], 1 }

</bundles_post_ra>
